<compile_context>
chip_gen: v7x
topology: tpu7x:2x2x1
jax: 0.10.0
libtpu: 0.0.40
codegen_flags: <defaults>
</compile_context>

<pallas_src>
import functools

import jax
import jax.numpy as jnp
from jax import lax
from jax.experimental import pallas as pl
from jax.experimental.pallas import tpu as pltpu


def mhsa_kernel(h_ref, wqkv_ref, wo_ref, bqkv_ref, bo_ref, out_ref, *, num_heads):
    Bt, S, E = h_ref.shape
    hd = E // num_heads
    in_dtype = h_ref.dtype

    # (Bt, S, E) -> (Bt*S, E): merge leading dims (lane axis untouched, cheap).
    h2d = h_ref[...].reshape(Bt * S, E)

    # Single fused QKV projection: one MXU push with N = 3E.
    # 1/sqrt(hd) is pre-folded into the Q columns of wqkv / bqkv on the host.
    qkv = jnp.dot(h2d, wqkv_ref[...], preferred_element_type=jnp.float32)
    qkv = (qkv + bqkv_ref[0]).astype(in_dtype)
    qkv = qkv.reshape(Bt, S, 3 * E)

    # Accumulate the output projection per head (no lane-axis concat).
    # Fold the output bias into the accumulator init.
    acc = jnp.broadcast_to(bo_ref[0], (Bt * S, E)).astype(jnp.float32)
    for hh in range(num_heads):
        lo = hh * hd
        q = qkv[:, :, lo:lo + hd]                         # (Bt, S, hd), pre-scaled
        k = qkv[:, :, E + lo:E + lo + hd]                 # (Bt, S, hd)
        v = qkv[:, :, 2 * E + lo:2 * E + lo + hd]         # (Bt, S, hd)

        # QK^T without an explicit transpose: contract the last dims directly,
        # batched over the per-step batch rows.
        scores = lax.dot_general(
            q, k, dimension_numbers=(((2,), (2,)), ((0,), (0,))),
            preferred_element_type=jnp.float32)           # (Bt, S, S)

        # Numerically-stable softmax (statistics in f32); approx reciprocal goes
        # to the EUP slot instead of the VALU.
        scores = scores - jnp.max(scores, axis=-1, keepdims=True)
        p = jnp.exp(scores)
        p = p * pl.reciprocal(jnp.sum(p, axis=-1, keepdims=True), approx=True)

        ctx = lax.dot_general(
            p.astype(in_dtype), v,
            dimension_numbers=(((2,), (1,)), ((0,), (0,))),
            preferred_element_type=jnp.float32)           # (Bt, S, hd)

        acc = acc + jnp.dot(ctx.reshape(Bt * S, hd).astype(in_dtype),
                            wo_ref[lo:lo + hd, :],
                            preferred_element_type=jnp.float32)

    out_ref[...] = acc.reshape(Bt, S, E).astype(out_ref.dtype)

    # TODO(synk): optional attention `mask` argument (mask==0 -> -inf) is not
    # wired in; only the mask=None path of the PyTorch forward is implemented.


def _pick_block_b(B, S, E, itemsize, vmem_budget_bytes=8 * 1024 * 1024):
    # Rough per-batch-row working set: h + qkv + out (native dtype) plus one
    # head's f32 score/prob matrices.
    per_row = S * E * itemsize * 6 + S * S * 4 * 2
    bt = max(1, min(B, vmem_budget_bytes // max(per_row, 1)))
    while B % bt:
        bt -= 1
    return bt


def multi_head_self_attention(H, params, *, num_heads, block_b=None):
    """H: (B, S, E). params: dict of PyTorch-layout weights/biases."""
    B, S, E = H.shape
    hd = E // num_heads
    assert E % num_heads == 0
    scale = float(hd) ** 0.5

    # PyTorch Linear is y = x @ W.T + b with W stored (out, in); pre-transpose
    # to (in, out).  Fold 1/scale into the Q projection (weights AND bias).
    wq = params["W_Q.weight"].T / scale
    wk = params["W_K.weight"].T
    wv = params["W_V.weight"].T
    wo = params["Mat_Mul.weight"].T
    bq = params["W_Q.bias"] / scale
    bk = params["W_K.bias"]
    bv = params["W_V.bias"]
    bo = params["Mat_Mul.bias"].reshape(1, E)

    wqkv = jnp.concatenate([wq, wk, wv], axis=1)              # (E, 3E)
    bqkv = jnp.concatenate([bq, bk, bv]).reshape(1, 3 * E)    # (1, 3E)

    itemsize = jnp.dtype(H.dtype).itemsize
    if block_b is None:
        block_b = _pick_block_b(B, S, E, itemsize)
    assert B % block_b == 0

    kernel = functools.partial(mhsa_kernel, num_heads=num_heads)

    # Advisory cost estimate so XLA schedules around this custom call sensibly.
    flops = 2 * B * S * E * (3 * E) + 4 * B * S * S * E + 2 * B * S * E * E
    transcendentals = B * num_heads * S * S
    bytes_accessed = (2 * B * S * E) * itemsize + (4 * E * E + 4 * E) * itemsize
    cost = pl.CostEstimate(flops=flops, transcendentals=transcendentals,
                           bytes_accessed=bytes_accessed)

    # TODO(synk): for very long sequences, add a second grid axis with
    # flash-style KV tiling (online softmax) to cap the live (S, S) scores.
    return pl.pallas_call(
        kernel,
        out_shape=jax.ShapeDtypeStruct((B, S, E), H.dtype),
        grid_spec=pltpu.PrefetchScalarGridSpec(
            num_scalar_prefetch=0,
            grid=(B // block_b,),
            in_specs=[
                pl.BlockSpec((block_b, S, E), lambda b: (b, 0, 0)),   # H
                pl.BlockSpec((E, 3 * E), lambda b: (0, 0)),           # fused Wqkv
                pl.BlockSpec((E, E), lambda b: (0, 0)),               # Wo
                pl.BlockSpec((1, 3 * E), lambda b: (0, 0)),           # fused bqkv
                pl.BlockSpec((1, E), lambda b: (0, 0)),               # bo
            ],
            out_specs=pl.BlockSpec((block_b, S, E), lambda b: (b, 0, 0)),
        ),
        compiler_params=pltpu.CompilerParams(
            dimension_semantics=("parallel",)),
        cost_estimate=cost,
    )(H, wqkv, wo, bqkv, bo)


def reference_mhsa(H, params, *, num_heads):
    """Plain-JAX replica of the PyTorch forward (mask=None) for checking."""
    B, S, E = H.shape
    hd = E // num_heads
    scale = float(hd) ** 0.5

    def lin(x, w, b):
        return x @ w.T + b

    Q = lin(H, params["W_Q.weight"], params["W_Q.bias"])
    K = lin(H, params["W_K.weight"], params["W_K.bias"])
    V = lin(H, params["W_V.weight"], params["W_V.bias"])
    Q = Q.reshape(B, S, num_heads, hd).transpose(0, 2, 1, 3)
    K = K.reshape(B, S, num_heads, hd).transpose(0, 2, 1, 3)
    V = V.reshape(B, S, num_heads, hd).transpose(0, 2, 1, 3)
    scores = jnp.einsum("bhqd,bhkd->bhqk", Q, K) / scale
    p = jax.nn.softmax(scores, axis=-1)
    ctx = jnp.einsum("bhqk,bhkd->bhqd", p, V)
    ctx = ctx.transpose(0, 2, 1, 3).reshape(B, S, E)
    return lin(ctx, params["Mat_Mul.weight"], params["Mat_Mul.bias"])


if __name__ == "__main__":
    batch, seq, embd_dim, num_heads = 2, 8, 32, 4

    key = jax.random.PRNGKey(0)
    k_h, k_wq, k_wk, k_wv, k_wo, k_bq, k_bk, k_bv, k_bo = jax.random.split(key, 9)

    H = jax.random.normal(k_h, (batch, seq, embd_dim), dtype=jnp.float32)

    # Deterministic synthetic parameters (PyTorch Linear layout: weight (out, in)).
    s = 1.0 / (embd_dim ** 0.5)
    params = {
        "W_Q.weight":     jax.random.uniform(k_wq, (embd_dim, embd_dim), jnp.float32, -s, s),
        "W_K.weight":     jax.random.uniform(k_wk, (embd_dim, embd_dim), jnp.float32, -s, s),
        "W_V.weight":     jax.random.uniform(k_wv, (embd_dim, embd_dim), jnp.float32, -s, s),
        "Mat_Mul.weight": jax.random.uniform(k_wo, (embd_dim, embd_dim), jnp.float32, -s, s),
        "W_Q.bias":       jax.random.uniform(k_bq, (embd_dim,), jnp.float32, -s, s),
        "W_K.bias":       jax.random.uniform(k_bk, (embd_dim,), jnp.float32, -s, s),
        "W_V.bias":       jax.random.uniform(k_bv, (embd_dim,), jnp.float32, -s, s),
        "Mat_Mul.bias":   jax.random.uniform(k_bo, (embd_dim,), jnp.float32, -s, s),
    }

    out = multi_head_self_attention(H, params, num_heads=num_heads)
    out = jax.block_until_ready(out)

    ref = reference_mhsa(H, params, num_heads=num_heads)
    assert out.shape == (batch, seq, embd_dim)
    # Tolerance accounts for the approx (EUP) reciprocal in the softmax denominator.
    assert jnp.allclose(out, ref, atol=2e-2, rtol=2e-2), "mismatch vs reference"

    print("KERNEL_OK")
</pallas_src>

<mosaic_0001>
module attributes {stable_mosaic.version = 11 : i64} {
  func.func @mhsa_kernel(%arg0: i32, %arg1: memref<2x8x32xf32, #tpu.memory_space<vmem>>, %arg2: memref<32x96xf32, #tpu.memory_space<vmem>>, %arg3: memref<32x32xf32, #tpu.memory_space<vmem>>, %arg4: memref<1x96xf32, #tpu.memory_space<vmem>>, %arg5: memref<1x32xf32, #tpu.memory_space<vmem>>, %arg6: memref<2x8x32xf32, #tpu.memory_space<vmem>>) attributes {dimension_semantics = [#tpu.dimension_semantics<parallel>], iteration_bounds = array<i64: 1>, scalar_prefetch = 0 : i64, scratch_operands = 0 : i64, tpu.core_type = #tpu.core_type<tc>, window_params = [{transform_indices = @transform_0, window_bounds = array<i64: 2, 8, 32>}, {pipeline_mode = #tpu.pipeline_mode<synchronous>, transform_indices = @transform_1, window_bounds = array<i64: 32, 96>}, {pipeline_mode = #tpu.pipeline_mode<synchronous>, transform_indices = @transform_2, window_bounds = array<i64: 32, 32>}, {pipeline_mode = #tpu.pipeline_mode<synchronous>, transform_indices = @transform_3, window_bounds = array<i64: 1, 96>}, {pipeline_mode = #tpu.pipeline_mode<synchronous>, transform_indices = @transform_4, window_bounds = array<i64: 1, 32>}, {transform_indices = @transform_5, window_bounds = array<i64: 2, 8, 32>}]} {
    %c0 = arith.constant 0 : index
    %c0_0 = arith.constant 0 : index
    %c0_1 = arith.constant 0 : index
    %0 = vector.load %arg1[%c0, %c0_0, %c0_1] : memref<2x8x32xf32, #tpu.memory_space<vmem>>, vector<2x8x32xf32>
    %1 = vector.shape_cast %0 : vector<2x8x32xf32> to vector<16x32xf32>
    %c0_2 = arith.constant 0 : index
    %c0_3 = arith.constant 0 : index
    %2 = vector.load %arg2[%c0_2, %c0_3] : memref<32x96xf32, #tpu.memory_space<vmem>>, vector<32x96xf32>
    %cst = arith.constant dense<0.000000e+00> : vector<16x96xf32>
    %3 = tpu.matmul %1, %2, %cst {dimension_numbers = #tpu.dot_dimension_numbers<[1], [0], [0], [1], [0, 0, 1, 1], [], []>} : vector<16x32xf32>, vector<32x96xf32>, vector<16x96xf32> -> vector<16x96xf32>
    %c0_4 = arith.constant 0 : index
    %c0_5 = arith.constant 0 : index
    %4 = vector.load %arg4[%c0_4, %c0_5] : memref<1x96xf32, #tpu.memory_space<vmem>>, vector<1x96xf32>
    %5 = vector.shape_cast %4 : vector<1x96xf32> to vector<96xf32>
    %6 = vector.shape_cast %5 : vector<96xf32> to vector<1x96xf32>
    %7 = vector.broadcast %6 : vector<1x96xf32> to vector<16x96xf32>
    %8 = arith.addf %3, %7 : vector<16x96xf32>
    %9 = vector.shape_cast %8 : vector<16x96xf32> to vector<2x8x96xf32>
    %c0_6 = arith.constant 0 : index
    %c0_7 = arith.constant 0 : index
    %10 = vector.load %arg5[%c0_6, %c0_7] : memref<1x32xf32, #tpu.memory_space<vmem>>, vector<1x32xf32>
    %11 = vector.shape_cast %10 : vector<1x32xf32> to vector<32xf32>
    %12 = vector.shape_cast %11 : vector<32xf32> to vector<1x32xf32>
    %13 = vector.broadcast %12 : vector<1x32xf32> to vector<16x32xf32>
    %14 = vector.extract_strided_slice %9 {offsets = [0, 0, 0], sizes = [2, 8, 8], strides = [1, 1, 1]} : vector<2x8x96xf32> to vector<2x8x8xf32>
    %15 = vector.extract_strided_slice %9 {offsets = [0, 0, 32], sizes = [2, 8, 8], strides = [1, 1, 1]} : vector<2x8x96xf32> to vector<2x8x8xf32>
    %16 = vector.extract_strided_slice %9 {offsets = [0, 0, 64], sizes = [2, 8, 8], strides = [1, 1, 1]} : vector<2x8x96xf32> to vector<2x8x8xf32>
    %cst_8 = arith.constant dense<0.000000e+00> : vector<2x8x8xf32>
    %17 = tpu.matmul %14, %15, %cst_8 {dimension_numbers = #tpu.dot_dimension_numbers<[2], [2], [1], [1], [0, 0, 0, 1, 1, 1], [0], [0]>} : vector<2x8x8xf32>, vector<2x8x8xf32>, vector<2x8x8xf32> -> vector<2x8x8xf32>
    %cst_9 = arith.constant dense<0xFF800000> : vector<2x8xf32>
    %18 = vector.multi_reduction <maximumf>, %17, %cst_9 [2] : vector<2x8x8xf32> to vector<2x8xf32>
    %19 = vector.shape_cast %18 : vector<2x8xf32> to vector<2x8x1xf32>
    %20 = vector.broadcast %19 : vector<2x8x1xf32> to vector<2x8x8xf32>
    %21 = arith.subf %17, %20 : vector<2x8x8xf32>
    %22 = math.exp %21 : vector<2x8x8xf32>
    %cst_10 = arith.constant dense<0.000000e+00> : vector<2x8xf32>
    %23 = vector.multi_reduction <add>, %22, %cst_10 [2] : vector<2x8x8xf32> to vector<2x8xf32>
    %24 = vector.shape_cast %23 : vector<2x8xf32> to vector<2x8x1xf32>
    %25 = tpu.reciprocal %24 {approx = true} : vector<2x8x1xf32> -> vector<2x8x1xf32>
    %26 = vector.broadcast %25 : vector<2x8x1xf32> to vector<2x8x8xf32>
    %27 = arith.mulf %22, %26 : vector<2x8x8xf32>
    %cst_11 = arith.constant dense<0.000000e+00> : vector<2x8x8xf32>
    %28 = tpu.matmul %27, %16, %cst_11 {dimension_numbers = #tpu.dot_dimension_numbers<[2], [1], [1], [2], [0, 0, 0, 1, 1, 2], [0], [0]>} : vector<2x8x8xf32>, vector<2x8x8xf32>, vector<2x8x8xf32> -> vector<2x8x8xf32>
    %29 = vector.shape_cast %28 : vector<2x8x8xf32> to vector<16x8xf32>
    %c0_12 = arith.constant 0 : index
    %c0_13 = arith.constant 0 : index
    %30 = vector.load %arg3[%c0_12, %c0_13] : memref<32x32xf32, #tpu.memory_space<vmem>>, vector<8x32xf32>
    %cst_14 = arith.constant dense<0.000000e+00> : vector<16x32xf32>
    %31 = tpu.matmul %29, %30, %cst_14 {dimension_numbers = #tpu.dot_dimension_numbers<[1], [0], [0], [1], [0, 0, 1, 1], [], []>} : vector<16x8xf32>, vector<8x32xf32>, vector<16x32xf32> -> vector<16x32xf32>
    %32 = arith.addf %13, %31 : vector<16x32xf32>
    %33 = vector.extract_strided_slice %9 {offsets = [0, 0, 8], sizes = [2, 8, 8], strides = [1, 1, 1]} : vector<2x8x96xf32> to vector<2x8x8xf32>
    %34 = vector.extract_strided_slice %9 {offsets = [0, 0, 40], sizes = [2, 8, 8], strides = [1, 1, 1]} : vector<2x8x96xf32> to vector<2x8x8xf32>
    %35 = vector.extract_strided_slice %9 {offsets = [0, 0, 72], sizes = [2, 8, 8], strides = [1, 1, 1]} : vector<2x8x96xf32> to vector<2x8x8xf32>
    %cst_15 = arith.constant dense<0.000000e+00> : vector<2x8x8xf32>
    %36 = tpu.matmul %33, %34, %cst_15 {dimension_numbers = #tpu.dot_dimension_numbers<[2], [2], [1], [1], [0, 0, 0, 1, 1, 1], [0], [0]>} : vector<2x8x8xf32>, vector<2x8x8xf32>, vector<2x8x8xf32> -> vector<2x8x8xf32>
    %cst_16 = arith.constant dense<0xFF800000> : vector<2x8xf32>
    %37 = vector.multi_reduction <maximumf>, %36, %cst_16 [2] : vector<2x8x8xf32> to vector<2x8xf32>
    %38 = vector.shape_cast %37 : vector<2x8xf32> to vector<2x8x1xf32>
    %39 = vector.broadcast %38 : vector<2x8x1xf32> to vector<2x8x8xf32>
    %40 = arith.subf %36, %39 : vector<2x8x8xf32>
    %41 = math.exp %40 : vector<2x8x8xf32>
    %cst_17 = arith.constant dense<0.000000e+00> : vector<2x8xf32>
    %42 = vector.multi_reduction <add>, %41, %cst_17 [2] : vector<2x8x8xf32> to vector<2x8xf32>
    %43 = vector.shape_cast %42 : vector<2x8xf32> to vector<2x8x1xf32>
    %44 = tpu.reciprocal %43 {approx = true} : vector<2x8x1xf32> -> vector<2x8x1xf32>
    %45 = vector.broadcast %44 : vector<2x8x1xf32> to vector<2x8x8xf32>
    %46 = arith.mulf %41, %45 : vector<2x8x8xf32>
    %cst_18 = arith.constant dense<0.000000e+00> : vector<2x8x8xf32>
    %47 = tpu.matmul %46, %35, %cst_18 {dimension_numbers = #tpu.dot_dimension_numbers<[2], [1], [1], [2], [0, 0, 0, 1, 1, 2], [0], [0]>} : vector<2x8x8xf32>, vector<2x8x8xf32>, vector<2x8x8xf32> -> vector<2x8x8xf32>
    %48 = vector.shape_cast %47 : vector<2x8x8xf32> to vector<16x8xf32>
    %c8 = arith.constant 8 : index
    %c0_19 = arith.constant 0 : index
    %49 = vector.load %arg3[%c8, %c0_19] : memref<32x32xf32, #tpu.memory_space<vmem>>, vector<8x32xf32>
    %cst_20 = arith.constant dense<0.000000e+00> : vector<16x32xf32>
    %50 = tpu.matmul %48, %49, %cst_20 {dimension_numbers = #tpu.dot_dimension_numbers<[1], [0], [0], [1], [0, 0, 1, 1], [], []>} : vector<16x8xf32>, vector<8x32xf32>, vector<16x32xf32> -> vector<16x32xf32>
    %51 = arith.addf %32, %50 : vector<16x32xf32>
    %52 = vector.extract_strided_slice %9 {offsets = [0, 0, 16], sizes = [2, 8, 8], strides = [1, 1, 1]} : vector<2x8x96xf32> to vector<2x8x8xf32>
    %53 = vector.extract_strided_slice %9 {offsets = [0, 0, 48], sizes = [2, 8, 8], strides = [1, 1, 1]} : vector<2x8x96xf32> to vector<2x8x8xf32>
    %54 = vector.extract_strided_slice %9 {offsets = [0, 0, 80], sizes = [2, 8, 8], strides = [1, 1, 1]} : vector<2x8x96xf32> to vector<2x8x8xf32>
    %cst_21 = arith.constant dense<0.000000e+00> : vector<2x8x8xf32>
    %55 = tpu.matmul %52, %53, %cst_21 {dimension_numbers = #tpu.dot_dimension_numbers<[2], [2], [1], [1], [0, 0, 0, 1, 1, 1], [0], [0]>} : vector<2x8x8xf32>, vector<2x8x8xf32>, vector<2x8x8xf32> -> vector<2x8x8xf32>
    %cst_22 = arith.constant dense<0xFF800000> : vector<2x8xf32>
    %56 = vector.multi_reduction <maximumf>, %55, %cst_22 [2] : vector<2x8x8xf32> to vector<2x8xf32>
    %57 = vector.shape_cast %56 : vector<2x8xf32> to vector<2x8x1xf32>
    %58 = vector.broadcast %57 : vector<2x8x1xf32> to vector<2x8x8xf32>
    %59 = arith.subf %55, %58 : vector<2x8x8xf32>
    %60 = math.exp %59 : vector<2x8x8xf32>
    %cst_23 = arith.constant dense<0.000000e+00> : vector<2x8xf32>
    %61 = vector.multi_reduction <add>, %60, %cst_23 [2] : vector<2x8x8xf32> to vector<2x8xf32>
    %62 = vector.shape_cast %61 : vector<2x8xf32> to vector<2x8x1xf32>
    %63 = tpu.reciprocal %62 {approx = true} : vector<2x8x1xf32> -> vector<2x8x1xf32>
    %64 = vector.broadcast %63 : vector<2x8x1xf32> to vector<2x8x8xf32>
    %65 = arith.mulf %60, %64 : vector<2x8x8xf32>
    %cst_24 = arith.constant dense<0.000000e+00> : vector<2x8x8xf32>
    %66 = tpu.matmul %65, %54, %cst_24 {dimension_numbers = #tpu.dot_dimension_numbers<[2], [1], [1], [2], [0, 0, 0, 1, 1, 2], [0], [0]>} : vector<2x8x8xf32>, vector<2x8x8xf32>, vector<2x8x8xf32> -> vector<2x8x8xf32>
    %67 = vector.shape_cast %66 : vector<2x8x8xf32> to vector<16x8xf32>
    %c16 = arith.constant 16 : index
    %c0_25 = arith.constant 0 : index
    %68 = vector.load %arg3[%c16, %c0_25] : memref<32x32xf32, #tpu.memory_space<vmem>>, vector<8x32xf32>
    %cst_26 = arith.constant dense<0.000000e+00> : vector<16x32xf32>
    %69 = tpu.matmul %67, %68, %cst_26 {dimension_numbers = #tpu.dot_dimension_numbers<[1], [0], [0], [1], [0, 0, 1, 1], [], []>} : vector<16x8xf32>, vector<8x32xf32>, vector<16x32xf32> -> vector<16x32xf32>
    %70 = arith.addf %51, %69 : vector<16x32xf32>
    %71 = vector.extract_strided_slice %9 {offsets = [0, 0, 24], sizes = [2, 8, 8], strides = [1, 1, 1]} : vector<2x8x96xf32> to vector<2x8x8xf32>
    %72 = vector.extract_strided_slice %9 {offsets = [0, 0, 56], sizes = [2, 8, 8], strides = [1, 1, 1]} : vector<2x8x96xf32> to vector<2x8x8xf32>
    %73 = vector.extract_strided_slice %9 {offsets = [0, 0, 88], sizes = [2, 8, 8], strides = [1, 1, 1]} : vector<2x8x96xf32> to vector<2x8x8xf32>
    %cst_27 = arith.constant dense<0.000000e+00> : vector<2x8x8xf32>
    %74 = tpu.matmul %71, %72, %cst_27 {dimension_numbers = #tpu.dot_dimension_numbers<[2], [2], [1], [1], [0, 0, 0, 1, 1, 1], [0], [0]>} : vector<2x8x8xf32>, vector<2x8x8xf32>, vector<2x8x8xf32> -> vector<2x8x8xf32>
    %cst_28 = arith.constant dense<0xFF800000> : vector<2x8xf32>
    %75 = vector.multi_reduction <maximumf>, %74, %cst_28 [2] : vector<2x8x8xf32> to vector<2x8xf32>
    %76 = vector.shape_cast %75 : vector<2x8xf32> to vector<2x8x1xf32>
    %77 = vector.broadcast %76 : vector<2x8x1xf32> to vector<2x8x8xf32>
    %78 = arith.subf %74, %77 : vector<2x8x8xf32>
    %79 = math.exp %78 : vector<2x8x8xf32>
    %cst_29 = arith.constant dense<0.000000e+00> : vector<2x8xf32>
    %80 = vector.multi_reduction <add>, %79, %cst_29 [2] : vector<2x8x8xf32> to vector<2x8xf32>
    %81 = vector.shape_cast %80 : vector<2x8xf32> to vector<2x8x1xf32>
    %82 = tpu.reciprocal %81 {approx = true} : vector<2x8x1xf32> -> vector<2x8x1xf32>
    %83 = vector.broadcast %82 : vector<2x8x1xf32> to vector<2x8x8xf32>
    %84 = arith.mulf %79, %83 : vector<2x8x8xf32>
    %cst_30 = arith.constant dense<0.000000e+00> : vector<2x8x8xf32>
    %85 = tpu.matmul %84, %73, %cst_30 {dimension_numbers = #tpu.dot_dimension_numbers<[2], [1], [1], [2], [0, 0, 0, 1, 1, 2], [0], [0]>} : vector<2x8x8xf32>, vector<2x8x8xf32>, vector<2x8x8xf32> -> vector<2x8x8xf32>
    %86 = vector.shape_cast %85 : vector<2x8x8xf32> to vector<16x8xf32>
    %c24 = arith.constant 24 : index
    %c0_31 = arith.constant 0 : index
    %87 = vector.load %arg3[%c24, %c0_31] : memref<32x32xf32, #tpu.memory_space<vmem>>, vector<8x32xf32>
    %cst_32 = arith.constant dense<0.000000e+00> : vector<16x32xf32>
    %88 = tpu.matmul %86, %87, %cst_32 {dimension_numbers = #tpu.dot_dimension_numbers<[1], [0], [0], [1], [0, 0, 1, 1], [], []>} : vector<16x8xf32>, vector<8x32xf32>, vector<16x32xf32> -> vector<16x32xf32>
    %89 = arith.addf %70, %88 : vector<16x32xf32>
    %90 = vector.shape_cast %89 : vector<16x32xf32> to vector<2x8x32xf32>
    %c0_33 = arith.constant 0 : index
    %c0_34 = arith.constant 0 : index
    %c0_35 = arith.constant 0 : index
    %91 = vector.load %arg6[%c0_33, %c0_34, %c0_35] : memref<2x8x32xf32, #tpu.memory_space<vmem>>, vector<2x8x32xf32>
    tpu.vector_store %arg6[%c0_33, %c0_34, %c0_35], %90 {strides = array<i32>} : memref<2x8x32xf32, #tpu.memory_space<vmem>>, vector<2x8x32xf32>,
    return
  }
  func.func @transform_0(%arg0: i32) -> (i32, i32, i32) {
    %c0_i32 = arith.constant 0 : i32
    %c0_i32_0 = arith.constant 0 : i32
    %c0_i32_1 = arith.constant 0 : i32
    return %arg0, %c0_i32, %c0_i32_0 : i32, i32, i32
  }
  func.func @transform_1(%arg0: i32) -> (i32, i32) {
    %c0_i32 = arith.constant 0 : i32
    %c0_i32_0 = arith.constant 0 : i32
    %c0_i32_1 = arith.constant 0 : i32
    return %c0_i32, %c0_i32_0 : i32, i32
  }
  func.func @transform_2(%arg0: i32) -> (i32, i32) {
    %c0_i32 = arith.constant 0 : i32
    %c0_i32_0 = arith.constant 0 : i32
    %c0_i32_1 = arith.constant 0 : i32
    return %c0_i32, %c0_i32_0 : i32, i32
  }
  func.func @transform_3(%arg0: i32) -> (i32, i32) {
    %c0_i32 = arith.constant 0 : i32
    %c0_i32_0 = arith.constant 0 : i32
    %c0_i32_1 = arith.constant 0 : i32
    return %c0_i32, %c0_i32_0 : i32, i32
  }
  func.func @transform_4(%arg0: i32) -> (i32, i32) {
    %c0_i32 = arith.constant 0 : i32
    %c0_i32_0 = arith.constant 0 : i32
    %c0_i32_1 = arith.constant 0 : i32
    return %c0_i32, %c0_i32_0 : i32, i32
  }
  func.func @transform_5(%arg0: i32) -> (i32, i32, i32) {
    %c0_i32 = arith.constant 0 : i32
    %c0_i32_0 = arith.constant 0 : i32
    %c0_i32_1 = arith.constant 0 : i32
    return %arg0, %c0_i32, %c0_i32_0 : i32, i32, i32
  }
}

</mosaic_0001>

<bundles_post_ra>
// kernel: tpu_custom_call.1
= control target key start
LH: loop header
LB: loop body
LE: loop exit
PB: predicated region body
PF: predicated region fallthrough
CT: control target
= control target key end

     0   :  { %10 = vsyncpa [#allocation3], 0  ;;  %s2453_s0 = inlined_call_operand.hbm [shape: f32[2,8,32], index: 0, kind: input, shape index: {}]   ;;  %s2454_s1 = inlined_call_operand.hbm [shape: f32[32,96], index: 1, kind: input, shape index: {}]   ;;  %s2455_s2 = inlined_call_operand.hbm [shape: f32[32,32], index: 2, kind: input, shape index: {}]   ;;  %s2456_s3 = inlined_call_operand.vmem [shape: f32[1,96], index: 3, kind: input, shape index: {}]   ;;  %s2457_s4 = inlined_call_operand.vmem [shape: f32[1,32], index: 4, kind: input, shape index: {}]   ;;  %s2458_s5 = inlined_call_operand.hbm [shape: f32[2,8,32], index: 5, kind: output, shape index: {}]  }
   0x1   :  { %11 = vsyncpa [#allocation6], 0 }
   0x2   :  { %12 = vsyncpa [#allocation4], 0  ;;  %s2197_s18 = smov [#allocation5]   ;;  %s2198_s20 = smov [#allocation2]  }
   0x3   :  { %s30_s19 = sshll.u32 %s2197_s18, 4  ;;  %s18_s21 = sshll.u32 %s2198_s20, 4  ;;  %s31_s19 = int_to_ptr.vmem [resolvable:$true] %s30_s19  ;;  %s2246_s21 = int_to_ptr.vmem [resolvable:$true] %s18_s21 }
   0x4   :  { %s2103_s24 = scalar_lea.hbm %s2454_s1, 512 }
   0x5   :  { %p2104_p0 = scmp.ne.s32.totalorder %s2454_s1, %s2103_s24  ;;  %p2107_p1 = scmp.lt.u32.totalorder %s2103_s24, %s2454_s1 }
   0x7   :  { %p2109_p2 = pnand %p2107_p1, %p2104_p0 }
   0x9   :  { %2112 = shalt.err (!%p2109_p2)
}
   0xa   :  { %s2113_s29 = scalar_lea.vmem %s31_s19, 512  ;;  %p2118_p4 = scmp.lt.s32.totalorder %s31_s19, %s31_s19 }
   0xb   :  { %p2114_p3 = scmp.ne.s32.totalorder %s31_s19, %s2113_s29  ;;  %p2119_p5 = scmp.lt.s32.totalorder %s2113_s29, %s2113_s29 }
   0xd   :  { %p2120_p6 = por %p2119_p5, %p2118_p4 }
   0xf   :  { %p2121_p7 = pnand %p2120_p6, %p2114_p3 }
  0x11   :  { %2124 = shalt.err (!%p2121_p7)
}
  0x12   :  { %s2199_s30 = smov 128   ;;  %s2200_s6 = smov 8  }
  0x13   :  { %36 = dma.hbm_to_vmem [thread:$0]  %s2454_s1, 512, %s31_s19, [#allocation6], %s2199_s30, %s2199_s30, %s2200_s6  }
  0x14   :  { %s2125_s11 = scalar_lea.hbm %s2453_s0, 256 }
  0x15   :  { %p2126_p8 = scmp.ne.s32.totalorder %s2453_s0, %s2125_s11  ;;  %p2129_p9 = scmp.lt.u32.totalorder %s2125_s11, %s2453_s0 }
  0x17   :  { %p2131_p10 = pnand %p2129_p9, %p2126_p8 }
  0x19   :  { %2134 = shalt.err (!%p2131_p10)
}
  0x1a   :  { %s2135_s16 = scalar_lea.vmem %s2246_s21, 256  ;;  %p2140_p12 = scmp.lt.s32.totalorder %s2246_s21, %s2246_s21 }
  0x1b   :  { %p2136_p11 = scmp.ne.s32.totalorder %s2246_s21, %s2135_s16  ;;  %p2141_p13 = scmp.lt.s32.totalorder %s2135_s16, %s2135_s16 }
  0x1d   :  { %p2142_p0 = por %p2141_p13, %p2140_p12 }
  0x1f   :  { %p2143_p1 = pnand %p2142_p0, %p2136_p11 }
  0x21   :  { %2146 = shalt.err (!%p2143_p1)
}
  0x22   :  { %24 = dma.hbm_to_vmem [thread:$0]  %s2453_s0, 256, %s2246_s21, [#allocation3], %s2199_s30, %s2199_s30, %s2200_s6  }
  0x23   :  { %s2201_s18 = smov [#allocation7]   ;;  %s2147_s23 = scalar_lea.hbm %s2455_s2, 512 }
  0x24   :  { %s42_s19 = sshll.u32 %s2201_s18, 4  ;;  %p2148_p2 = scmp.ne.s32.totalorder %s2455_s2, %s2147_s23  ;;  %s43_s19 = int_to_ptr.vmem [resolvable:$true] %s42_s19 }
  0x25   :  { %p2151_p3 = scmp.lt.u32.totalorder %s2147_s23, %s2455_s2 }
  0x27   :  { %p2153_p4 = pnand %p2151_p3, %p2148_p2 }
  0x29   :  { %2156 = shalt.err (!%p2153_p4)
}
  0x2a   :  { %s2157_s28 = scalar_lea.vmem %s43_s19, 512  ;;  %p2162_p6 = scmp.lt.s32.totalorder %s43_s19, %s43_s19 }
  0x2b   :  { %p2158_p5 = scmp.ne.s32.totalorder %s43_s19, %s2157_s28  ;;  %p2163_p7 = scmp.lt.s32.totalorder %s2157_s28, %s2157_s28 }
  0x2d   :  { %p2164_p8 = por %p2163_p7, %p2162_p6 }
  0x2f   :  { %p2165_p9 = pnand %p2164_p8, %p2158_p5 }
  0x31   :  { %2168 = shalt.err (!%p2165_p9)
}
  0x32   :  { %48 = dma.hbm_to_vmem [thread:$0]  %s2455_s2, 512, %s43_s19, [#allocation6], %s2199_s30, %s2199_s30, %s2200_s6  }
  0x33   :  { %2191 = dma.done.wait [#allocation3], 256  }
  0x34   :  { %2192 = vsyncadd [#allocation3], 4294967040 }
  0x35   :  { %2193 = dma.done.wait [#allocation6], 1024  }
  0x36   :  { %2194 = vsyncadd [#allocation6], 4294966272  ;;  %vm75_vm0 = vcmask 261120   ;;  %v64_v0 = vld [vmem:[#allocation5] sm:$0xff]  ;;  %v65_v1 = vld [vmem:[#allocation5 + $0x8] sm:$0xff]  ;;  %v2202_v8 = vmov 0.0  }
  0x37   :  { %v66_v2 = vld [vmem:[#allocation5 + $0x10] sm:$0xff]  ;;  %v2036_v3 = vpack.c.bf16 %v65_v1, %v64_v0  ;;  %v67_v4 = vld [vmem:[#allocation5 + $0x18] sm:$0xff]  ;;  %1936 = vmatprep.subr.mxu1 %v2202_v8  ;;  %vm2203_vm1 = vmmov 0   ;;  %s2204_s7 = smov 96   ;;  %vm167_vm2 = vcmask 64512   ;;  %s2206_s8 = smov 88  }
  0x38   :  { %v62_v5 = vld [vmem:[#allocation2] sm:$0xff]  ;;  %v2040_v6 = vpack.c.bf16 %v67_v4, %v66_v2  ;;  %v63_v7 = vld [vmem:[#allocation2 + $0x8] sm:$0xff]  ;;  %1938 = vmatprep.mubr.msk.f32.mxu1 %vm2203_vm1, %v2202_v8  ;;  %s2207_s9 = smov 120   ;;  %v493_v33 = vld [vmem:[#allocation7] sm:$0xff]  ;;  %s2208_s10 = smov 56  }
  0x39   :  { %1933 = vmatprep.mubr.msk.f32.mxu0 %vm75_vm0, %v62_v5  ;;  %2037 = vmatprep.subr.bf16.mxu0 %v2036_v3  ;;  %v1839_v9 = vld [vmem:[%s2456_s3] ss:$0 sm:$0xff]  ;;  %s2205_s3 = smov 64   ;;  %s2209_s11 = smov 112  }
  0x3a   :  { %2039 = vmatpush3.bf16.msra.mxu0 %v2036_v3  ;;  %s2210_s12 = smov 80   ;;  %s2211_s13 = smov 48  }
  0x3b   :  { %2041 = vmatprep.subr.bf16.mxu0 %v2040_v6  ;;  %s2212_s14 = smov 72   ;;  %s2213_s15 = smov 104  }
  0x3c   :  { %s2214_s16 = smov 40   ;;  %s2215_s18 = smov [#allocation8]  }
  0x3d   :  { %s1826_s19 = sshll.u32 %s2215_s18, 4  ;;  %s1827_s19 = int_to_ptr.vmem [resolvable:$true] %s1826_s19 }
  0x3e   :  { %2043 = vmatpush3.bf16.msra.mxu0 %v2040_v6  ;;  %s2169_s20 = scalar_lea.vmem %s1827_s19, 256  ;;  %p2174_p11 = scmp.lt.s32.totalorder %s1827_s19, %s1827_s19 }
  0x3f   :  { %1956 = vmatprep.subr.mxu0 %v493_v33  ;;  %p2170_p10 = scmp.ne.s32.totalorder %s1827_s19, %s2169_s20  ;;  %p2175_p12 = scmp.lt.s32.totalorder %s2169_s20, %s2169_s20 }
  0x41   :  { %1934 = vmatmul.mubr.msk.f32.vlgmr.msra.gmra.mrb[0].mxu0 %vm75_vm0, %v63_v7  ;;  %p2176_p13 = por %p2175_p12, %p2174_p11 }
  0x42   :  { %1957 = vmatpush3.msra.mxu0 %v493_v33 }
  0x43   :  { %1966 = vmatprep.subr.mxu0 %v2202_v8  ;;  %p2177_p0 = pnand %p2176_p13, %p2170_p10 }
 0x114   :  { %v1935_v10 = vpop.f32.mrb[0].mxu0 }
 0x115   :  { %v148_v11 = vpop.f32.mrb[1].mxu0  ;;  %v2309_v13 = vadd.f32 %v1935_v10, %v1839_v9 }
 0x116   :  { %v2306_v12 = vadd.f32 %v1839_v9, %v148_v11 }
 0x118   :  { %165 = vrot.lane.b32.xlu0 %v2306_v12, %s2204_s7 }
 0x11c   :  { %243 = vrot.lane.b32.xlu0 %v2309_v13, %s2204_s7 }
 0x18a   :  { %v166_v14 = vpop.permute.xlu0 %165 }
 0x18b   :  { %1937 = vmatpush3.xpose.msk.msra.mxu1 %vm167_vm2, %v166_v14 }
 0x18c   :  { %1941 = vmatprep.subr.mxu1 %v2202_v8 }
 0x18e   :  { %1939 = vmatmul.mubr.msk.f32.vlgmr.msra.gmra.mrb[0].mxu1 %vm167_vm2, %v2306_v12  ;;  %v244_v15 = vpop.permute.xlu0 %243 }
 0x18f   :  { %1942 = vmatpush3.xpose.msk.msra.mxu1 %vm167_vm2, %v244_v15  ;;  %1943 = vmatprep.mubr.msk.f32.mxu1 %vm2203_vm1, %v2202_v8 }
 0x190   :  { %1946 = vmatprep.subr.mxu1 %v2202_v8 }
 0x192   :  { %1944 = vmatmul.mubr.msk.f32.vlgmr.msra.gmra.mrb[2].mxu1 %vm167_vm2, %v2309_v13 }
 0x193   :  { %1948 = vmatprep.mubr.msk.f32.mxu1 %vm2203_vm1, %v2202_v8 }
 0x261   :  { %v238_v16 = vpop.f32.mrb[0].mxu1 }
 0x262   :  { %v1940_v17 = vpop.f32.mrb[1].mxu1  ;;  %v319_v18 = vsel %vm167_vm2, %v238_v16, -inf }
 0x263   :  { %320 = vmax.xlane.f32.xlu1 %v319_v18 }
 0x265   :  { %v315_v19 = vpop.f32.mrb[2].mxu1 }
 0x266   :  { %v1945_v20 = vpop.f32.mrb[3].mxu1  ;;  %v322_v21 = vsel %vm167_vm2, %v315_v19, -inf }
 0x267   :  { %323 = vmax.xlane.f32.xlu1 %v322_v21 }
 0x278   :  { %341 = vrot.lane.b32.xlu1 %v2306_v12, %s2205_s3 }
 0x2f0   :  { %v321_v22 = vpop.xlane.xlu1 %320 }
 0x2f1   :  { %v325_v23 = vsub.f32 %v238_v16, %v321_v22 }
 0x2f3   :  { %v327_v24 = vmul.f32 1.442695, %v325_v23 }
 0x2f4   :  { %v324_v25 = vpop.xlane.xlu1 %323 }
 0x2f5   :  { %2071 = vpow2.f32 %v327_v24  ;;  %v326_v26 = vsub.f32 %v315_v19, %v324_v25  ;;  %v907_v25 = vld [vmem:[#allocation7 + $0x8] sm:$0xff] }
 0x2f7   :  { %v329_v27 = vmul.f32 1.442695, %v326_v26 }
 0x2f8   :  { %v342_v28 = vpop.permute.xlu1 %341 }
 0x2f9   :  { %2073 = vpow2.f32 %v329_v27  ;;  %1947 = vmatpush3.msra.mxu1 %v342_v28 }
 0x2fa   :  { %1951 = vmatprep.subr.mxu1 %v2202_v8 }
 0x2ff   :  { %v2072_v29 = vpop.eup %2071 }
 0x300   :  { %v331_v30 = vsel %vm167_vm2, %v2072_v29, 0.0 }
 0x301   :  { %332 = vadd.xlane.f32.xlu0 %v331_v30 }
 0x303   :  { %v2074_v31 = vpop.eup %2073 }
 0x304   :  { %v334_v32 = vsel %vm167_vm2, %v2074_v31, 0.0 }
 0x305   :  { %335 = vadd.xlane.f32.xlu1 %v334_v32 }
 0x316   :  { %417 = vrot.lane.b32.xlu1 %v2309_v13, %s2205_s3 }
 0x317   :  { %657 = vrot.lane.b32.xlu0 %v2309_v13, %s2206_s8 }
 0x31a   :  { %579 = vrot.lane.b32.xlu1 %v2306_v12, %s2206_s8 }
 0x31e   :  { %577 = vrot.lane.b32.xlu1 %v2306_v12, %s2207_s9 }
 0x322   :  { %655 = vrot.lane.b32.xlu1 %v2309_v13, %s2207_s9 }
 0x38e   :  { %v333_v34 = vpop.xlane.xlu0 %332 }
 0x38f   :  { %2075 = vrcp.f32 %v333_v34 }
 0x392   :  { %v336_v35 = vpop.xlane.xlu1 %335  ;;  %v658_v46 = vpop.permute.xlu0 %657 }
 0x393   :  { %2077 = vrcp.f32 %v336_v35 }
 0x396   :  { %v418_v38 = vpop.permute.xlu1 %417 }
 0x399   :  { %v2076_v36 = vpop.eup %2075 }
 0x39a   :  { %v339_v37 = vmul.f32 %v2076_v36, %v2072_v29  ;;  %v580_v41 = vpop.permute.xlu1 %579 }
 0x39c   :  { %1949 = vmatmul.mubr.msk.f32.vlgmr.msra.gmra.mrb[4].mxu1 %vm167_vm2, %v339_v37 }
 0x39d   :  { %v2078_v39 = vpop.eup %2077  ;;  %1952 = vmatpush3.msra.mxu1 %v418_v38  ;;  %1953 = vmatprep.mubr.msk.f32.mxu1 %vm2203_vm1, %v2202_v8 }
 0x39e   :  { %v340_v40 = vmul.f32 %v2078_v39, %v2074_v31  ;;  %1961 = vmatprep.subr.mxu1 %v2202_v8  ;;  %v578_v42 = vpop.permute.xlu1 %577 }
 0x3a0   :  { %1954 = vmatmul.mubr.msk.f32.vlgmr.msra.gmra.mrb[6].mxu1 %vm167_vm2, %v340_v40  ;;  %v1321_v40 = vld [vmem:[#allocation7 + $0x10] sm:$0xff] }
 0x3a1   :  { %1963 = vmatprep.mubr.msk.f32.mxu1 %vm2203_vm1, %v2202_v8 }
 0x3a2   :  { %v656_v48 = vpop.permute.xlu1 %655 }
 0x3a4   :  { %1962 = vmatpush3.xpose.msk.msra.mxu1 %vm167_vm2, %v580_v41 }
 0x3a5   :  { %1971 = vmatprep.subr.mxu1 %v2202_v8 }
 0x3a7   :  { %1964 = vmatmul.mubr.msk.f32.vlgmr.msra.gmra.mrb[8].mxu1 %vm167_vm2, %v578_v42 }
 0x3a8   :  { %1973 = vmatprep.mubr.msk.f32.mxu1 %vm2203_vm1, %v2202_v8 }
 0x46f   :  { %v413_v43 = vpop.f32.mrb[4].mxu1 }
 0x470   :  { %v1950_v44 = vpop.f32.mrb[5].mxu1  ;;  %1958 = vmatprep.mubr.msk.f32.mxu0 %vm167_vm2, %v413_v43 }
 0x473   :  { %v489_v45 = vpop.f32.mrb[6].mxu1 }
 0x474   :  { %v1955_v47 = vpop.f32.mrb[7].mxu1  ;;  %1959 = vmatmul.mubr.msk.f32.vlgmr.msra.gmra.mrb[2].mxu0 %vm167_vm2, %v489_v45 }
 0x475   :  { %1967 = vmatpush3.xpose.msk.msra.mxu0 %vm167_vm2, %v658_v46  ;;  %1968 = vmatprep.mubr.msk.f32.mxu0 %vm2203_vm1, %v2202_v8 }
 0x476   :  { %1976 = vmatprep.subr.mxu0 %v2202_v8 }
 0x478   :  { %1969 = vmatmul.mubr.msk.f32.vlgmr.msra.gmra.mrb[4].mxu0 %vm167_vm2, %v656_v48 }
 0x479   :  { %1978 = vmatprep.mubr.msk.f32.mxu0 %vm2203_vm1, %v2202_v8 }
 0x47a   :  { %v651_v49 = vpop.f32.mrb[8].mxu1 }
 0x47b   :  { %v1965_v50 = vpop.f32.mrb[9].mxu1  ;;  %v733_v51 = vsel %vm167_vm2, %v651_v49, -inf }
 0x47c   :  { %734 = vmax.xlane.f32.xlu1 %v733_v51 }
 0x48d   :  { %755 = vrot.lane.b32.xlu1 %v2306_v12, %s2208_s10 }
 0x491   :  { %991 = vrot.lane.b32.xlu1 %v2306_v12, %s2209_s11 }
 0x495   :  { %1071 = vrot.lane.b32.xlu1 %v2309_v13, %s2210_s12 }
 0x499   :  { %1069 = vrot.lane.b32.xlu1 %v2309_v13, %s2209_s11 }
 0x509   :  { %v735_v52 = vpop.xlane.xlu1 %734 }
 0x50a   :  { %v739_v53 = vsub.f32 %v651_v49, %v735_v52 }
 0x50c   :  { %v741_v54 = vmul.f32 1.442695, %v739_v53 }
 0x50d   :  { %v756_v55 = vpop.permute.xlu1 %755 }
 0x50e   :  { %2079 = vpow2.f32 %v741_v54  ;;  %1972 = vmatpush3.msra.mxu1 %v756_v55 }
 0x50f   :  { %1986 = vmatprep.subr.mxu1 %v2202_v8 }
 0x511   :  { %v992_v62 = vpop.permute.xlu1 %991 }
 0x515   :  { %v1072_v2 = vpop.permute.xlu1 %1071 }
 0x518   :  { %v2080_v56 = vpop.eup %2079 }
 0x519   :  { %v745_v57 = vsel %vm167_vm2, %v2080_v56, 0.0  ;;  %v1070_v3 = vpop.permute.xlu1 %1069 }
 0x51a   :  { %746 = vadd.xlane.f32.xlu0 %v745_v57 }
 0x530   :  { %993 = vrot.lane.b32.xlu0 %v2306_v12, %s2210_s12 }
 0x54b   :  { %v729_v58 = vpop.f32.mrb[4].mxu0 }
 0x54c   :  { %v1970_v59 = vpop.f32.mrb[5].mxu0  ;;  %v736_v60 = vsel %vm167_vm2, %v729_v58, -inf }
 0x54d   :  { %737 = vmax.xlane.f32.xlu1 %v736_v60 }
 0x5a7   :  { %v747_v61 = vpop.xlane.xlu0 %746 }
 0x5a8   :  { %2081 = vrcp.f32 %v747_v61 }
 0x5ab   :  { %v994_v1 = vpop.permute.xlu0 %993 }
 0x5b2   :  { %v2082_v63 = vpop.eup %2081 }
 0x5b3   :  { %v753_v0 = vmul.f32 %v2082_v63, %v2080_v56 }
 0x5b5   :  { %1974 = vmatmul.mubr.msk.f32.vlgmr.msra.gmra.mrb[10].mxu1 %vm167_vm2, %v753_v0 }
 0x5b6   :  { %1987 = vmatpush3.xpose.msk.msra.mxu1 %vm167_vm2, %v994_v1  ;;  %1988 = vmatprep.mubr.msk.f32.mxu1 %vm2203_vm1, %v2202_v8 }
 0x5b7   :  { %1991 = vmatprep.subr.mxu1 %v2202_v8 }
 0x5b9   :  { %1989 = vmatmul.mubr.msk.f32.vlgmr.msra.gmra.mrb[12].mxu1 %vm167_vm2, %v992_v62 }
 0x5ba   :  { %1992 = vmatpush3.xpose.msk.msra.mxu1 %vm167_vm2, %v1072_v2  ;;  %1993 = vmatprep.mubr.msk.f32.mxu1 %vm2203_vm1, %v2202_v8 }
 0x5bb   :  { %2001 = vmatprep.subr.mxu1 %v2202_v8 }
 0x5bd   :  { %1994 = vmatmul.mubr.msk.f32.vlgmr.msra.gmra.mrb[14].mxu1 %vm167_vm2, %v1070_v3 }
 0x5be   :  { %2003 = vmatprep.mubr.msk.f32.mxu1 %vm2203_vm1, %v2202_v8 }
 0x5da   :  { %v738_v4 = vpop.xlane.xlu1 %737 }
 0x5db   :  { %v740_v5 = vsub.f32 %v729_v58, %v738_v4 }
 0x5dd   :  { %v743_v6 = vmul.f32 1.442695, %v740_v5 }
 0x5df   :  { %2083 = vpow2.f32 %v743_v6 }
 0x5e9   :  { %v2084_v7 = vpop.eup %2083 }
 0x5ea   :  { %v748_v9 = vsel %vm167_vm2, %v2084_v7, 0.0 }
 0x5eb   :  { %749 = vadd.xlane.f32.xlu0 %v748_v9 }
 0x601   :  { %831 = vrot.lane.b32.xlu0 %v2309_v13, %s2208_s10 }
 0x605   :  { %1245 = vrot.lane.b32.xlu0 %v2309_v13, %s2211_s13 }
 0x609   :  { %1407 = vrot.lane.b32.xlu0 %v2306_v12, %s2212_s14 }
 0x60d   :  { %1485 = vrot.lane.b32.xlu0 %v2309_v13, %s2212_s14 }
 0x611   :  { %1405 = vrot.lane.b32.xlu0 %v2306_v12, %s2213_s15 }
 0x678   :  { %v750_v10 = vpop.xlane.xlu0 %749 }
 0x679   :  { %2085 = vrcp.f32 %v750_v10 }
 0x67c   :  { %v832_v11 = vpop.permute.xlu0 %831 }
 0x67d   :  { %1977 = vmatpush3.msra.mxu0 %v832_v11 }
 0x67e   :  { %1981 = vmatprep.subr.mxu0 %v907_v25 }
 0x680   :  { %v1246_v14 = vpop.permute.xlu0 %1245 }
 0x681   :  { %2002 = vmatpush3.msra.mxu1 %v1246_v14 }
 0x682   :  { %2011 = vmatprep.subr.mxu1 %v2202_v8 }
 0x683   :  { %v2086_v15 = vpop.eup %2085 }
 0x684   :  { %v754_v16 = vmul.f32 %v2086_v15, %v2084_v7  ;;  %v1408_v42 = vpop.permute.xlu0 %1407 }
 0x686   :  { %1979 = vmatmul.mubr.msk.f32.vlgmr.msra.gmra.mrb[6].mxu0 %vm167_vm2, %v754_v16 }
 0x687   :  { %1982 = vmatpush3.msra.mxu0 %v907_v25 }
 0x688   :  { %v827_v17 = vpop.f32.mrb[10].mxu1  ;;  %1996 = vmatprep.subr.mxu0 %v2202_v8  ;;  %v1486_v46 = vpop.permute.xlu0 %1485 }
 0x689   :  { %v1975_v18 = vpop.f32.mrb[11].mxu1  ;;  %1983 = vmatprep.mubr.msk.f32.mxu0 %vm167_vm2, %v827_v17 }
 0x68c   :  { %v1065_v19 = vpop.f32.mrb[12].mxu1  ;;  %v1406_v48 = vpop.permute.xlu0 %1405 }
 0x68d   :  { %v1990_v20 = vpop.f32.mrb[13].mxu1  ;;  %v1147_v21 = vsel %vm167_vm2, %v1065_v19, -inf }
 0x68e   :  { %1148 = vmax.xlane.f32.xlu1 %v1147_v21 }
 0x690   :  { %v1143_v22 = vpop.f32.mrb[14].mxu1 }
 0x691   :  { %v1995_v23 = vpop.f32.mrb[15].mxu1  ;;  %v1150_v24 = vsel %vm167_vm2, %v1143_v22, -inf }
 0x692   :  { %1151 = vmax.xlane.f32.xlu1 %v1150_v24 }
 0x71b   :  { %v1149_v26 = vpop.xlane.xlu1 %1148 }
 0x71c   :  { %v1153_v27 = vsub.f32 %v1065_v19, %v1149_v26 }
 0x71e   :  { %v1155_v28 = vmul.f32 1.442695, %v1153_v27 }
 0x71f   :  { %v1152_v29 = vpop.xlane.xlu1 %1151 }
 0x720   :  { %2087 = vpow2.f32 %v1155_v28  ;;  %v1154_v30 = vsub.f32 %v1143_v22, %v1152_v29 }
 0x722   :  { %v1157_v31 = vmul.f32 1.442695, %v1154_v30 }
 0x724   :  { %2089 = vpow2.f32 %v1157_v31 }
 0x72a   :  { %v2088_v32 = vpop.eup %2087 }
 0x72b   :  { %v1159_v33 = vsel %vm167_vm2, %v2088_v32, 0.0 }
 0x72c   :  { %1160 = vadd.xlane.f32.xlu1 %v1159_v33 }
 0x72e   :  { %v2090_v34 = vpop.eup %2089 }
 0x72f   :  { %v1162_v35 = vsel %vm167_vm2, %v2090_v34, 0.0 }
 0x730   :  { %1163 = vadd.xlane.f32.xlu1 %v1162_v35 }
 0x741   :  { %1169 = vrot.lane.b32.xlu1 %v2306_v12, %s2211_s13 }
 0x745   :  { %1483 = vrot.lane.b32.xlu1 %v2309_v13, %s2213_s15 }
 0x759   :  { %v903_v36 = vpop.f32.mrb[6].mxu0 }
 0x75a   :  { %v1980_v37 = vpop.f32.mrb[7].mxu0  ;;  %1984 = vmatmul.mubr.msk.f32.vlgmr.msra.gmra.mrb[2].mxu0 %vm167_vm2, %v903_v36 }
 0x75b   :  { %1998 = vmatprep.mubr.msk.f32.mxu0 %vm2203_vm1, %v2202_v8 }
 0x7b9   :  { %v1161_v38 = vpop.xlane.xlu1 %1160 }
 0x7ba   :  { %2091 = vrcp.f32 %v1161_v38 }
 0x7bd   :  { %v1164_v39 = vpop.xlane.xlu1 %1163 }
 0x7be   :  { %2093 = vrcp.f32 %v1164_v39 }
 0x7c1   :  { %v1170_v41 = vpop.permute.xlu1 %1169 }
 0x7c2   :  { %1997 = vmatpush3.msra.mxu0 %v1170_v41 }
 0x7c3   :  { %2006 = vmatprep.subr.mxu0 %v1321_v40 }
 0x7c4   :  { %v2092_v43 = vpop.eup %2091 }
 0x7c5   :  { %v1167_v44 = vmul.f32 %v2092_v43, %v2088_v32  ;;  %v1484_v53 = vpop.permute.xlu1 %1483 }
 0x7c7   :  { %1999 = vmatmul.mubr.msk.f32.vlgmr.msra.gmra.mrb[8].mxu0 %vm167_vm2, %v1167_v44 }
 0x7c8   :  { %v2094_v45 = vpop.eup %2093  ;;  %2007 = vmatpush3.msra.mxu0 %v1321_v40 }
 0x7c9   :  { %v1168_v47 = vmul.f32 %v2094_v45, %v2090_v34  ;;  %2016 = vmatprep.subr.mxu0 %v2202_v8 }
 0x7cb   :  { %2004 = vmatmul.mubr.msk.f32.vlgmr.msra.gmra.mrb[16].mxu1 %vm167_vm2, %v1168_v47 }
 0x7cc   :  { %2012 = vmatpush3.xpose.msk.msra.mxu1 %vm167_vm2, %v1408_v42  ;;  %2013 = vmatprep.mubr.msk.f32.mxu1 %vm2203_vm1, %v2202_v8 }
 0x7cd   :  { %2021 = vmatprep.subr.mxu1 %v2202_v8 }
 0x7cf   :  { %2014 = vmatmul.mubr.msk.f32.vlgmr.msra.gmra.mrb[18].mxu1 %vm167_vm2, %v1406_v48 }
 0x7d0   :  { %2023 = vmatprep.mubr.msk.f32.mxu1 %vm2203_vm1, %v2202_v8 }
 0x89a   :  { %v1241_v49 = vpop.f32.mrb[8].mxu0 }
 0x89b   :  { %v2000_v50 = vpop.f32.mrb[9].mxu0  ;;  %2008 = vmatprep.mubr.msk.f32.mxu0 %vm167_vm2, %v1241_v49 }
 0x89e   :  { %v1317_v51 = vpop.f32.mrb[16].mxu1 }
 0x89f   :  { %v2005_v52 = vpop.f32.mrb[17].mxu1  ;;  %2009 = vmatmul.mubr.msk.f32.vlgmr.msra.gmra.mrb[2].mxu0 %vm167_vm2, %v1317_v51 }
 0x8a0   :  { %2017 = vmatpush3.xpose.msk.msra.mxu0 %vm167_vm2, %v1486_v46  ;;  %2018 = vmatprep.mubr.msk.f32.mxu0 %vm2203_vm1, %v2202_v8 }
 0x8a1   :  { %2026 = vmatprep.subr.mxu0 %v2202_v8 }
 0x8a2   :  { %v1479_v54 = vpop.f32.mrb[18].mxu1 }
 0x8a3   :  { %v2015_v55 = vpop.f32.mrb[19].mxu1  ;;  %2019 = vmatmul.mubr.msk.f32.vlgmr.msra.gmra.mrb[10].mxu0 %vm167_vm2, %v1484_v53  ;;  %v1561_v56 = vsel %vm167_vm2, %v1479_v54, -inf }
 0x8a4   :  { %1562 = vmax.xlane.f32.xlu0 %v1561_v56  ;;  %2028 = vmatprep.mubr.msk.f32.mxu0 %vm2203_vm1, %v2202_v8 }
 0x931   :  { %v1563_v57 = vpop.xlane.xlu0 %1562 }
 0x932   :  { %v1567_v58 = vsub.f32 %v1479_v54, %v1563_v57 }
 0x934   :  { %v1569_v59 = vmul.f32 1.442695, %v1567_v58 }
 0x936   :  { %2095 = vpow2.f32 %v1569_v59 }
 0x940   :  { %v2096_v60 = vpop.eup %2095 }
 0x941   :  { %v1573_v61 = vsel %vm167_vm2, %v2096_v60, 0.0 }
 0x942   :  { %1574 = vadd.xlane.f32.xlu0 %v1573_v61 }
 0x976   :  { %v1557_v62 = vpop.f32.mrb[10].mxu0 }
 0x977   :  { %v2020_v63 = vpop.f32.mrb[11].mxu0  ;;  %v1564_v0 = vsel %vm167_vm2, %v1557_v62, -inf }
 0x978   :  { %1565 = vmax.xlane.f32.xlu1 %v1564_v0 }
 0x989   :  { %1583 = vrot.lane.b32.xlu1 %v2306_v12, %s2214_s16  ;;  %v1735_v12 = vld [vmem:[#allocation7 + $0x18] sm:$0xff] }
 0x9cf   :  { %v1575_v1 = vpop.xlane.xlu0 %1574 }
 0x9d0   :  { %2097 = vrcp.f32 %v1575_v1 }
 0x9da   :  { %v2098_v8 = vpop.eup %2097 }
 0x9db   :  { %v1581_v5 = vmul.f32 %v2098_v8, %v2096_v60 }
 0xa05   :  { %v1566_v2 = vpop.xlane.xlu1 %1565 }
 0xa06   :  { %v1568_v3 = vsub.f32 %v1557_v62, %v1566_v2 }
 0xa08   :  { %v1571_v4 = vmul.f32 1.442695, %v1568_v3 }
 0xa09   :  { %v1584_v6 = vpop.permute.xlu1 %1583 }
 0xa0a   :  { %2099 = vpow2.f32 %v1571_v4  ;;  %2022 = vmatpush3.msra.mxu1 %v1584_v6 }
 0xa0b   :  { %2024 = vmatmul.mubr.msk.f32.vlgmr.msra.gmra.mrb[20].mxu1 %vm167_vm2, %v1581_v5 }
 0xa14   :  { %v2100_v7 = vpop.eup %2099 }
 0xa15   :  { %v1576_v9 = vsel %vm167_vm2, %v2100_v7, 0.0 }
 0xa16   :  { %1577 = vadd.xlane.f32.xlu0 %v1576_v9 }
 0xa2c   :  { %1659 = vrot.lane.b32.xlu0 %v2309_v13, %s2214_s16  ;;  %v1842_v13 = vld [vmem:[%s2457_s4] ss:$0 sm:$0xff] }
 0xaa3   :  { %v1578_v10 = vpop.xlane.xlu0 %1577 }
 0xaa4   :  { %2101 = vrcp.f32 %v1578_v10 }
 0xaa7   :  { %v1660_v11 = vpop.permute.xlu0 %1659 }
 0xaa8   :  { %2027 = vmatpush3.msra.mxu0 %v1660_v11 }
 0xaa9   :  { %2031 = vmatprep.subr.mxu0 %v1735_v12 }
 0xaae   :  { %v2102_v14 = vpop.eup %2101 }
 0xaaf   :  { %v1582_v15 = vmul.f32 %v2102_v14, %v2100_v7 }
 0xab1   :  { %2029 = vmatmul.mubr.msk.f32.vlgmr.msra.gmra.mrb[12].mxu0 %vm167_vm2, %v1582_v15 }
 0xab2   :  { %2032 = vmatpush3.msra.mxu0 %v1735_v12 }
 0xade   :  { %v1655_v16 = vpop.f32.mrb[20].mxu1 }
 0xadf   :  { %v2025_v17 = vpop.f32.mrb[21].mxu1  ;;  %2033 = vmatprep.mubr.msk.f32.mxu0 %vm167_vm2, %v1655_v16 }
 0xb84   :  { %v1731_v18 = vpop.f32.mrb[12].mxu0 }
 0xb85   :  { %v2030_v19 = vpop.f32.mrb[13].mxu0  ;;  %2034 = vmatmul.mubr.msk.f32.vlgmr.msra.gmra.mrb[2].mxu0 %vm167_vm2, %v1731_v18 }
 0xc58   :  { %v2035_v20 = vpop.f32.mrb[2].mxu0 }
 0xc59   :  { %v2044_v21 = vadd.f32 %v2035_v20, %v1842_v13  ;;  %v1808_v22 = vpop.f32.mrb[3].mxu0 }
 0xc5a   :  { %v2045_v23 = vadd.f32 %v1842_v13, %v1808_v22 }
 0xc5b   :  { %1820 = vst.msk [vmem:[#allocation8 + $0x8] sm:$0xff] %vm75_vm0, %v2044_v21 }
 0xc5c   :  { %1819 = vst.msk [vmem:[#allocation8] sm:$0xff] %vm75_vm0, %v2045_v23 }
 0xc5d   :  { %2180 = shalt.err (!%p2177_p0)
}
 0xc5e   :  { %s2181_s23 = scalar_lea.hbm %s2458_s5, 256 }
 0xc5f   :  { %p2182_p1 = scmp.ne.s32.totalorder %s2458_s5, %s2181_s23  ;;  %p2185_p2 = scmp.lt.u32.totalorder %s2181_s23, %s2458_s5 }
 0xc61   :  { %p2187_p3 = pnand %p2185_p2, %p2182_p1 }
 0xc63   :  { %2190 = shalt.err (!%p2187_p3)
}
 0xc64   :  { %1832 = dma.vmem_to_hbm [thread:$0]  %s1827_s19, 256, %s2458_s5, [#allocation4], %s2199_s30, %s2199_s30, %s2200_s6  }
 0xc65   :  { %2195 = dma.done.wait [#allocation4], 256  }
 0xc66   :  { %2196 = vsyncadd [#allocation4], 4294967040 }
 0xc67   :  { %1836 = vsyncpa [#allocation3], 1 }
 0xc68   :  { %1837 = vsyncpa [#allocation6], 1 }
 0xc69   :  { %1838 = vsyncpa [#allocation4], 1 }

</bundles_post_ra>
